<compile_context>
chip_gen: v7x
topology: tpu7x:2x2x1
jax: 0.10.0
libtpu: 0.0.40
codegen_flags: <defaults>
</compile_context>

<pallas_src>
import functools

import jax
import jax.numpy as jnp
from jax import lax
from jax.experimental import pallas as pl
from jax.experimental.pallas import tpu as pltpu


def _dsc_kernel(x_ref, wpos_ref, dww_ref, pww_ref, beta_ref, o_ref, *, k, p, h, w):
    # x_ref    : (1, C_in, H*W)  one image, spatial dims flattened onto lanes (VMEM)
    # wpos_ref : (1, H*W) int32  column index (j % W) of every lane           (VMEM)
    # dww_ref  : (C_in, k*k)     depthwise weights, [ci, kh*k + kw]           (VMEM)
    # pww_ref  : (C_out, C_in)   pointwise weights                            (VMEM)
    # beta_ref : (C_out, 1)      fused bias  pw_b + pw_w @ dw_b               (VMEM)
    # o_ref    : (1, C_out, H*W) output image, flattened                      (VMEM)
    c_in = x_ref.shape[1]
    c_out = o_ref.shape[1]
    hw = h * w

    x = x_ref[0].astype(jnp.float32)            # (C_in, HW)
    dww = dww_ref[...]                          # (C_in, k*k)
    pww = pww_ref[...]                          # (C_out, C_in)
    wpos = wpos_ref[...]                        # (1, HW) int32

    # Row membership comes from plain lane-index compares; column membership
    # from the precomputed wpos map (no in-kernel integer div/mod).
    lane = lax.broadcasted_iota(jnp.int32, (1, hw), 1)

    # ---- Depthwise k x k, vectorized over input channels (sublane axis). ----
    # Each tap: one XLU roll of the whole (C_in, HW) tile, a lane mask for the
    # zero-padding border, and one per-channel column FMA on the VPU.
    dw_acc = None
    for kh in range(k):
        dh = kh - p
        for kw in range(k):
            dwo = kw - p
            s = dh * w + dwo                    # flat lane offset of this tap
            tap = x if s == 0 else pltpu.roll(x, shift=(-s) % hw, axis=1)
            conds = []
            if dh < 0:
                conds.append(lane >= (-dh) * w)         # first -dh rows invalid
            if dh > 0:
                conds.append(lane < (h - dh) * w)       # last dh rows invalid
            if dwo < 0:
                conds.append(wpos >= -dwo)              # first -dwo cols invalid
            if dwo > 0:
                conds.append(wpos <= w - 1 - dwo)       # last dwo cols invalid
            if conds:
                m = conds[0]
                for c in conds[1:]:
                    m = m & c
                tap = jnp.where(m, tap, 0.0)
            term = tap * dww[:, kh * k + kw: kh * k + kw + 1]   # (C_in,1) weight col
            dw_acc = term if dw_acc is None else dw_acc + term

    # ---- Pointwise 1x1, vectorized over output channels (sublane axis). ----
    out = None
    for ci in range(c_in):
        row = jnp.broadcast_to(dw_acc[ci:ci + 1, :], (c_out, hw))
        term = row * pww[:, ci:ci + 1]
        out = term if out is None else out + term
    out = out + beta_ref[...]                   # fused depthwise + pointwise bias

    o_ref[0] = out.astype(o_ref.dtype)          # single lane-dense store


def dsc_forward(x_nchw, dw_w, dw_b, pw_w, pw_b, *, padding=1):
    """Fused depthwise-separable conv.  x_nchw: (N, C_in, H, W) -> (N, C_out, H, W)."""
    N, C_in, H, W = x_nchw.shape
    C_out = pw_w.shape[0]
    K = dw_w.shape[-1]
    P = padding
    if 2 * P != K - 1:
        raise ValueError("kernel assumes 'same' conv: 2*padding == k_size - 1")
    HW = H * W

    # Free, contiguous reshape: spatial dims flattened onto the lane axis.
    x_flat = x_nchw.reshape(N, C_in, HW)

    # Tiny parameters; biases of both convs fused into a single beta vector.
    dww = dw_w.reshape(C_in, K * K).astype(jnp.float32)            # [ci, kh*k+kw]
    pww = pw_w.reshape(C_out, C_in).astype(jnp.float32)            # [co, ci]
    beta = (pww @ dw_b.astype(jnp.float32)
            + pw_b.astype(jnp.float32)).reshape(C_out, 1)
    # Column index of every flattened lane (avoids in-kernel div/mod).
    wpos = (jnp.arange(HW, dtype=jnp.int32) % W).reshape(1, HW)

    kernel = functools.partial(_dsc_kernel, k=K, p=P, h=H, w=W)

    out_flat = pl.pallas_call(
        kernel,
        out_shape=jax.ShapeDtypeStruct((N, C_out, HW), x_nchw.dtype),
        grid_spec=pltpu.PrefetchScalarGridSpec(
            num_scalar_prefetch=0,
            grid=(N,),
            in_specs=[
                pl.BlockSpec((1, C_in, HW), lambda n: (n, 0, 0)),
                pl.BlockSpec((1, HW), lambda n: (0, 0)),
                pl.BlockSpec((C_in, K * K), lambda n: (0, 0)),
                pl.BlockSpec((C_out, C_in), lambda n: (0, 0)),
                pl.BlockSpec((C_out, 1), lambda n: (0, 0)),
            ],
            out_specs=pl.BlockSpec((1, C_out, HW), lambda n: (n, 0, 0)),
        ),
        compiler_params=pltpu.CompilerParams(
            # Batch axis is independent -> shardable across v7x's two TensorCores.
            dimension_semantics=("parallel",),
        ),
    )(x_flat, wpos, dww, pww, beta)

    return out_flat.reshape(N, C_out, H, W)


def _reference_dsc(x, dw_w, dw_b, pw_w, pw_b, padding=1):
    """Pure-JAX reference using lax.conv (NCHW), matching PyTorch semantics."""
    c_in = x.shape[1]
    dw = lax.conv_general_dilated(
        x, dw_w,
        window_strides=(1, 1),
        padding=((padding, padding), (padding, padding)),
        dimension_numbers=("NCHW", "OIHW", "NCHW"),
        feature_group_count=c_in,
        precision=lax.Precision.HIGHEST,
    ) + dw_b.reshape(1, -1, 1, 1)
    pw = lax.conv_general_dilated(
        dw, pw_w,
        window_strides=(1, 1),
        padding="VALID",
        dimension_numbers=("NCHW", "OIHW", "NCHW"),
        precision=lax.Precision.HIGHEST,
    ) + pw_b.reshape(1, -1, 1, 1)
    return pw


if __name__ == "__main__":
    # Small deterministic setup: N=2, C_in=4, C_out=8, H=W=16, k=3, pad=1.
    N, C_IN, C_OUT, H, W, K = 2, 4, 8, 16, 16, 3

    key = jax.random.PRNGKey(0)
    k_x, k_dww, k_dwb, k_pww, k_pwb = jax.random.split(key, 5)

    x = jax.random.normal(k_x, (N, C_IN, H, W), dtype=jnp.float32)

    # Deterministic parameter init (shapes match nn.Conv2d in the module).
    dw_w = 0.1 * jax.random.normal(k_dww, (C_IN, 1, K, K), dtype=jnp.float32)
    dw_b = 0.1 * jax.random.normal(k_dwb, (C_IN,), dtype=jnp.float32)
    pw_w = 0.1 * jax.random.normal(k_pww, (C_OUT, C_IN, 1, 1), dtype=jnp.float32)
    pw_b = 0.1 * jax.random.normal(k_pwb, (C_OUT,), dtype=jnp.float32)

    out = dsc_forward(x, dw_w, dw_b, pw_w, pw_b, padding=1)
    out = jax.block_until_ready(out)

    ref = _reference_dsc(x, dw_w, dw_b, pw_w, pw_b, padding=1)
    assert out.shape == (N, C_OUT, H, W)
    assert jnp.allclose(out, ref, atol=1e-4, rtol=1e-4), "Pallas DSC mismatch vs reference"

    print("KERNEL_OK")
</pallas_src>

<mosaic_0001>
module attributes {stable_mosaic.version = 11 : i64} {
  func.func @_dsc_kernel(%arg0: i32, %arg1: memref<1x4x256xf32, #tpu.memory_space<vmem>>, %arg2: memref<1x256xi32, #tpu.memory_space<vmem>>, %arg3: memref<4x9xf32, #tpu.memory_space<vmem>>, %arg4: memref<8x4xf32, #tpu.memory_space<vmem>>, %arg5: memref<8x1xf32, #tpu.memory_space<vmem>>, %arg6: memref<1x8x256xf32, #tpu.memory_space<vmem>>) attributes {dimension_semantics = [#tpu.dimension_semantics<parallel>], iteration_bounds = array<i64: 2>, scalar_prefetch = 0 : i64, scratch_operands = 0 : i64, tpu.core_type = #tpu.core_type<tc>, window_params = [{transform_indices = @transform_0, window_bounds = array<i64: 1, 4, 256>}, {pipeline_mode = #tpu.pipeline_mode<synchronous>, transform_indices = @transform_1, window_bounds = array<i64: 1, 256>}, {pipeline_mode = #tpu.pipeline_mode<synchronous>, transform_indices = @transform_2, window_bounds = array<i64: 4, 9>}, {pipeline_mode = #tpu.pipeline_mode<synchronous>, transform_indices = @transform_3, window_bounds = array<i64: 8, 4>}, {pipeline_mode = #tpu.pipeline_mode<synchronous>, transform_indices = @transform_4, window_bounds = array<i64: 8, 1>}, {transform_indices = @transform_5, window_bounds = array<i64: 1, 8, 256>}]} {
    %c0 = arith.constant 0 : index
    %c0_0 = arith.constant 0 : index
    %c0_1 = arith.constant 0 : index
    %0 = vector.load %arg1[%c0, %c0_0, %c0_1] : memref<1x4x256xf32, #tpu.memory_space<vmem>>, vector<1x4x256xf32>
    %1 = vector.shape_cast %0 : vector<1x4x256xf32> to vector<4x256xf32>
    %c0_2 = arith.constant 0 : index
    %c0_3 = arith.constant 0 : index
    %2 = vector.load %arg3[%c0_2, %c0_3] : memref<4x9xf32, #tpu.memory_space<vmem>>, vector<4x9xf32>
    %c0_4 = arith.constant 0 : index
    %c0_5 = arith.constant 0 : index
    %3 = vector.load %arg4[%c0_4, %c0_5] : memref<8x4xf32, #tpu.memory_space<vmem>>, vector<8x4xf32>
    %c0_6 = arith.constant 0 : index
    %c0_7 = arith.constant 0 : index
    %4 = vector.load %arg2[%c0_6, %c0_7] : memref<1x256xi32, #tpu.memory_space<vmem>>, vector<1x256xi32>
    %5 = tpu.iota {dimensions = array<i32: 1>} : vector<1x256xi32>
    %c17_i32 = arith.constant 17 : i32
    %6 = tpu.dynamic_rotate %1 by %c17_i32 dim 1 : vector<4x256xf32>, i32 -> vector<4x256xf32>
    %c16_i32 = arith.constant 16 : i32
    %7 = vector.broadcast %c16_i32 : i32 to vector<1x256xi32>
    %8 = arith.cmpi sge, %5, %7 : vector<1x256xi32>
    %c1_i32 = arith.constant 1 : i32
    %9 = vector.broadcast %c1_i32 : i32 to vector<1x256xi32>
    %10 = arith.cmpi sge, %4, %9 : vector<1x256xi32>
    %11 = arith.andi %8, %10 : vector<1x256xi1>
    %cst = arith.constant 0.000000e+00 : f32
    %12 = vector.shape_cast %11 : vector<1x256xi1> to vector<1x256xi1>
    %13 = vector.broadcast %12 : vector<1x256xi1> to vector<4x256xi1>
    %14 = vector.broadcast %cst : f32 to vector<4x256xf32>
    %15 = arith.select %13, %6, %14 : vector<4x256xi1>, vector<4x256xf32>
    %16 = vector.extract_strided_slice %2 {offsets = [0, 0], sizes = [4, 1], strides = [1, 1]} : vector<4x9xf32> to vector<4x1xf32>
    %17 = vector.broadcast %16 : vector<4x1xf32> to vector<4x256xf32>
    %18 = arith.mulf %15, %17 : vector<4x256xf32>
    %c16_i32_8 = arith.constant 16 : i32
    %19 = tpu.dynamic_rotate %1 by %c16_i32_8 dim 1 : vector<4x256xf32>, i32 -> vector<4x256xf32>
    %c16_i32_9 = arith.constant 16 : i32
    %20 = vector.broadcast %c16_i32_9 : i32 to vector<1x256xi32>
    %21 = arith.cmpi sge, %5, %20 : vector<1x256xi32>
    %cst_10 = arith.constant 0.000000e+00 : f32
    %22 = vector.shape_cast %21 : vector<1x256xi1> to vector<1x256xi1>
    %23 = vector.broadcast %22 : vector<1x256xi1> to vector<4x256xi1>
    %24 = vector.broadcast %cst_10 : f32 to vector<4x256xf32>
    %25 = arith.select %23, %19, %24 : vector<4x256xi1>, vector<4x256xf32>
    %26 = vector.extract_strided_slice %2 {offsets = [0, 1], sizes = [4, 1], strides = [1, 1]} : vector<4x9xf32> to vector<4x1xf32>
    %27 = vector.broadcast %26 : vector<4x1xf32> to vector<4x256xf32>
    %28 = arith.mulf %25, %27 : vector<4x256xf32>
    %29 = arith.addf %18, %28 : vector<4x256xf32>
    %c15_i32 = arith.constant 15 : i32
    %30 = tpu.dynamic_rotate %1 by %c15_i32 dim 1 : vector<4x256xf32>, i32 -> vector<4x256xf32>
    %c16_i32_11 = arith.constant 16 : i32
    %31 = vector.broadcast %c16_i32_11 : i32 to vector<1x256xi32>
    %32 = arith.cmpi sge, %5, %31 : vector<1x256xi32>
    %c14_i32 = arith.constant 14 : i32
    %33 = vector.broadcast %c14_i32 : i32 to vector<1x256xi32>
    %34 = arith.cmpi sle, %4, %33 : vector<1x256xi32>
    %35 = arith.andi %32, %34 : vector<1x256xi1>
    %cst_12 = arith.constant 0.000000e+00 : f32
    %36 = vector.shape_cast %35 : vector<1x256xi1> to vector<1x256xi1>
    %37 = vector.broadcast %36 : vector<1x256xi1> to vector<4x256xi1>
    %38 = vector.broadcast %cst_12 : f32 to vector<4x256xf32>
    %39 = arith.select %37, %30, %38 : vector<4x256xi1>, vector<4x256xf32>
    %40 = vector.extract_strided_slice %2 {offsets = [0, 2], sizes = [4, 1], strides = [1, 1]} : vector<4x9xf32> to vector<4x1xf32>
    %41 = vector.broadcast %40 : vector<4x1xf32> to vector<4x256xf32>
    %42 = arith.mulf %39, %41 : vector<4x256xf32>
    %43 = arith.addf %29, %42 : vector<4x256xf32>
    %c1_i32_13 = arith.constant 1 : i32
    %44 = tpu.dynamic_rotate %1 by %c1_i32_13 dim 1 : vector<4x256xf32>, i32 -> vector<4x256xf32>
    %c1_i32_14 = arith.constant 1 : i32
    %45 = vector.broadcast %c1_i32_14 : i32 to vector<1x256xi32>
    %46 = arith.cmpi sge, %4, %45 : vector<1x256xi32>
    %cst_15 = arith.constant 0.000000e+00 : f32
    %47 = vector.shape_cast %46 : vector<1x256xi1> to vector<1x256xi1>
    %48 = vector.broadcast %47 : vector<1x256xi1> to vector<4x256xi1>
    %49 = vector.broadcast %cst_15 : f32 to vector<4x256xf32>
    %50 = arith.select %48, %44, %49 : vector<4x256xi1>, vector<4x256xf32>
    %51 = vector.extract_strided_slice %2 {offsets = [0, 3], sizes = [4, 1], strides = [1, 1]} : vector<4x9xf32> to vector<4x1xf32>
    %52 = vector.broadcast %51 : vector<4x1xf32> to vector<4x256xf32>
    %53 = arith.mulf %50, %52 : vector<4x256xf32>
    %54 = arith.addf %43, %53 : vector<4x256xf32>
    %55 = vector.extract_strided_slice %2 {offsets = [0, 4], sizes = [4, 1], strides = [1, 1]} : vector<4x9xf32> to vector<4x1xf32>
    %56 = vector.broadcast %55 : vector<4x1xf32> to vector<4x256xf32>
    %57 = arith.mulf %1, %56 : vector<4x256xf32>
    %58 = arith.addf %54, %57 : vector<4x256xf32>
    %c255_i32 = arith.constant 255 : i32
    %59 = tpu.dynamic_rotate %1 by %c255_i32 dim 1 : vector<4x256xf32>, i32 -> vector<4x256xf32>
    %c14_i32_16 = arith.constant 14 : i32
    %60 = vector.broadcast %c14_i32_16 : i32 to vector<1x256xi32>
    %61 = arith.cmpi sle, %4, %60 : vector<1x256xi32>
    %cst_17 = arith.constant 0.000000e+00 : f32
    %62 = vector.shape_cast %61 : vector<1x256xi1> to vector<1x256xi1>
    %63 = vector.broadcast %62 : vector<1x256xi1> to vector<4x256xi1>
    %64 = vector.broadcast %cst_17 : f32 to vector<4x256xf32>
    %65 = arith.select %63, %59, %64 : vector<4x256xi1>, vector<4x256xf32>
    %66 = vector.extract_strided_slice %2 {offsets = [0, 5], sizes = [4, 1], strides = [1, 1]} : vector<4x9xf32> to vector<4x1xf32>
    %67 = vector.broadcast %66 : vector<4x1xf32> to vector<4x256xf32>
    %68 = arith.mulf %65, %67 : vector<4x256xf32>
    %69 = arith.addf %58, %68 : vector<4x256xf32>
    %c241_i32 = arith.constant 241 : i32
    %70 = tpu.dynamic_rotate %1 by %c241_i32 dim 1 : vector<4x256xf32>, i32 -> vector<4x256xf32>
    %c240_i32 = arith.constant 240 : i32
    %71 = vector.broadcast %c240_i32 : i32 to vector<1x256xi32>
    %72 = arith.cmpi slt, %5, %71 : vector<1x256xi32>
    %c1_i32_18 = arith.constant 1 : i32
    %73 = vector.broadcast %c1_i32_18 : i32 to vector<1x256xi32>
    %74 = arith.cmpi sge, %4, %73 : vector<1x256xi32>
    %75 = arith.andi %72, %74 : vector<1x256xi1>
    %cst_19 = arith.constant 0.000000e+00 : f32
    %76 = vector.shape_cast %75 : vector<1x256xi1> to vector<1x256xi1>
    %77 = vector.broadcast %76 : vector<1x256xi1> to vector<4x256xi1>
    %78 = vector.broadcast %cst_19 : f32 to vector<4x256xf32>
    %79 = arith.select %77, %70, %78 : vector<4x256xi1>, vector<4x256xf32>
    %80 = vector.extract_strided_slice %2 {offsets = [0, 6], sizes = [4, 1], strides = [1, 1]} : vector<4x9xf32> to vector<4x1xf32>
    %81 = vector.broadcast %80 : vector<4x1xf32> to vector<4x256xf32>
    %82 = arith.mulf %79, %81 : vector<4x256xf32>
    %83 = arith.addf %69, %82 : vector<4x256xf32>
    %c240_i32_20 = arith.constant 240 : i32
    %84 = tpu.dynamic_rotate %1 by %c240_i32_20 dim 1 : vector<4x256xf32>, i32 -> vector<4x256xf32>
    %c240_i32_21 = arith.constant 240 : i32
    %85 = vector.broadcast %c240_i32_21 : i32 to vector<1x256xi32>
    %86 = arith.cmpi slt, %5, %85 : vector<1x256xi32>
    %cst_22 = arith.constant 0.000000e+00 : f32
    %87 = vector.shape_cast %86 : vector<1x256xi1> to vector<1x256xi1>
    %88 = vector.broadcast %87 : vector<1x256xi1> to vector<4x256xi1>
    %89 = vector.broadcast %cst_22 : f32 to vector<4x256xf32>
    %90 = arith.select %88, %84, %89 : vector<4x256xi1>, vector<4x256xf32>
    %91 = vector.extract_strided_slice %2 {offsets = [0, 7], sizes = [4, 1], strides = [1, 1]} : vector<4x9xf32> to vector<4x1xf32>
    %92 = vector.broadcast %91 : vector<4x1xf32> to vector<4x256xf32>
    %93 = arith.mulf %90, %92 : vector<4x256xf32>
    %94 = arith.addf %83, %93 : vector<4x256xf32>
    %c239_i32 = arith.constant 239 : i32
    %95 = tpu.dynamic_rotate %1 by %c239_i32 dim 1 : vector<4x256xf32>, i32 -> vector<4x256xf32>
    %c240_i32_23 = arith.constant 240 : i32
    %96 = vector.broadcast %c240_i32_23 : i32 to vector<1x256xi32>
    %97 = arith.cmpi slt, %5, %96 : vector<1x256xi32>
    %c14_i32_24 = arith.constant 14 : i32
    %98 = vector.broadcast %c14_i32_24 : i32 to vector<1x256xi32>
    %99 = arith.cmpi sle, %4, %98 : vector<1x256xi32>
    %100 = arith.andi %97, %99 : vector<1x256xi1>
    %cst_25 = arith.constant 0.000000e+00 : f32
    %101 = vector.shape_cast %100 : vector<1x256xi1> to vector<1x256xi1>
    %102 = vector.broadcast %101 : vector<1x256xi1> to vector<4x256xi1>
    %103 = vector.broadcast %cst_25 : f32 to vector<4x256xf32>
    %104 = arith.select %102, %95, %103 : vector<4x256xi1>, vector<4x256xf32>
    %105 = vector.extract_strided_slice %2 {offsets = [0, 8], sizes = [4, 1], strides = [1, 1]} : vector<4x9xf32> to vector<4x1xf32>
    %106 = vector.broadcast %105 : vector<4x1xf32> to vector<4x256xf32>
    %107 = arith.mulf %104, %106 : vector<4x256xf32>
    %108 = arith.addf %94, %107 : vector<4x256xf32>
    %109 = vector.extract_strided_slice %108 {offsets = [0, 0], sizes = [1, 256], strides = [1, 1]} : vector<4x256xf32> to vector<1x256xf32>
    %110 = vector.shape_cast %109 : vector<1x256xf32> to vector<1x256xf32>
    %111 = vector.broadcast %110 : vector<1x256xf32> to vector<8x256xf32>
    %112 = vector.extract_strided_slice %3 {offsets = [0, 0], sizes = [8, 1], strides = [1, 1]} : vector<8x4xf32> to vector<8x1xf32>
    %113 = vector.broadcast %112 : vector<8x1xf32> to vector<8x256xf32>
    %114 = arith.mulf %111, %113 : vector<8x256xf32>
    %115 = vector.extract_strided_slice %108 {offsets = [1, 0], sizes = [1, 256], strides = [1, 1]} : vector<4x256xf32> to vector<1x256xf32>
    %116 = vector.shape_cast %115 : vector<1x256xf32> to vector<1x256xf32>
    %117 = vector.broadcast %116 : vector<1x256xf32> to vector<8x256xf32>
    %118 = vector.extract_strided_slice %3 {offsets = [0, 1], sizes = [8, 1], strides = [1, 1]} : vector<8x4xf32> to vector<8x1xf32>
    %119 = vector.broadcast %118 : vector<8x1xf32> to vector<8x256xf32>
    %120 = arith.mulf %117, %119 : vector<8x256xf32>
    %121 = arith.addf %114, %120 : vector<8x256xf32>
    %122 = vector.extract_strided_slice %108 {offsets = [2, 0], sizes = [1, 256], strides = [1, 1]} : vector<4x256xf32> to vector<1x256xf32>
    %123 = vector.shape_cast %122 : vector<1x256xf32> to vector<1x256xf32>
    %124 = vector.broadcast %123 : vector<1x256xf32> to vector<8x256xf32>
    %125 = vector.extract_strided_slice %3 {offsets = [0, 2], sizes = [8, 1], strides = [1, 1]} : vector<8x4xf32> to vector<8x1xf32>
    %126 = vector.broadcast %125 : vector<8x1xf32> to vector<8x256xf32>
    %127 = arith.mulf %124, %126 : vector<8x256xf32>
    %128 = arith.addf %121, %127 : vector<8x256xf32>
    %129 = vector.extract_strided_slice %108 {offsets = [3, 0], sizes = [1, 256], strides = [1, 1]} : vector<4x256xf32> to vector<1x256xf32>
    %130 = vector.shape_cast %129 : vector<1x256xf32> to vector<1x256xf32>
    %131 = vector.broadcast %130 : vector<1x256xf32> to vector<8x256xf32>
    %132 = vector.extract_strided_slice %3 {offsets = [0, 3], sizes = [8, 1], strides = [1, 1]} : vector<8x4xf32> to vector<8x1xf32>
    %133 = vector.broadcast %132 : vector<8x1xf32> to vector<8x256xf32>
    %134 = arith.mulf %131, %133 : vector<8x256xf32>
    %135 = arith.addf %128, %134 : vector<8x256xf32>
    %c0_26 = arith.constant 0 : index
    %c0_27 = arith.constant 0 : index
    %136 = vector.load %arg5[%c0_26, %c0_27] : memref<8x1xf32, #tpu.memory_space<vmem>>, vector<8x1xf32>
    %137 = vector.broadcast %136 : vector<8x1xf32> to vector<8x256xf32>
    %138 = arith.addf %135, %137 : vector<8x256xf32>
    %c0_28 = arith.constant 0 : index
    %c0_29 = arith.constant 0 : index
    %c0_30 = arith.constant 0 : index
    %139 = vector.load %arg6[%c0_28, %c0_29, %c0_30] : memref<1x8x256xf32, #tpu.memory_space<vmem>>, vector<1x8x256xf32>
    %140 = vector.shape_cast %139 : vector<1x8x256xf32> to vector<8x256xf32>
    %141 = vector.shape_cast %138 : vector<8x256xf32> to vector<1x8x256xf32>
    tpu.vector_store %arg6[%c0_28, %c0_29, %c0_30], %141 {strides = array<i32>} : memref<1x8x256xf32, #tpu.memory_space<vmem>>, vector<1x8x256xf32>,
    return
  }
  func.func @transform_0(%arg0: i32) -> (i32, i32, i32) {
    %c0_i32 = arith.constant 0 : i32
    %c0_i32_0 = arith.constant 0 : i32
    %c0_i32_1 = arith.constant 0 : i32
    return %arg0, %c0_i32, %c0_i32_0 : i32, i32, i32
  }
  func.func @transform_1(%arg0: i32) -> (i32, i32) {
    %c0_i32 = arith.constant 0 : i32
    %c0_i32_0 = arith.constant 0 : i32
    %c0_i32_1 = arith.constant 0 : i32
    return %c0_i32, %c0_i32_0 : i32, i32
  }
  func.func @transform_2(%arg0: i32) -> (i32, i32) {
    %c0_i32 = arith.constant 0 : i32
    %c0_i32_0 = arith.constant 0 : i32
    %c0_i32_1 = arith.constant 0 : i32
    return %c0_i32, %c0_i32_0 : i32, i32
  }
  func.func @transform_3(%arg0: i32) -> (i32, i32) {
    %c0_i32 = arith.constant 0 : i32
    %c0_i32_0 = arith.constant 0 : i32
    %c0_i32_1 = arith.constant 0 : i32
    return %c0_i32, %c0_i32_0 : i32, i32
  }
  func.func @transform_4(%arg0: i32) -> (i32, i32) {
    %c0_i32 = arith.constant 0 : i32
    %c0_i32_0 = arith.constant 0 : i32
    %c0_i32_1 = arith.constant 0 : i32
    return %c0_i32, %c0_i32_0 : i32, i32
  }
  func.func @transform_5(%arg0: i32) -> (i32, i32, i32) {
    %c0_i32 = arith.constant 0 : i32
    %c0_i32_0 = arith.constant 0 : i32
    %c0_i32_1 = arith.constant 0 : i32
    return %arg0, %c0_i32, %c0_i32_0 : i32, i32, i32
  }
}

</mosaic_0001>

<bundles_post_ra>
// kernel: tpu_custom_call.1
= control target key start
LH: loop header
LB: loop body
LE: loop exit
PB: predicated region body
PF: predicated region fallthrough
CT: control target
= control target key end

     0   :  { %10 = vsyncpa [#allocation3], 0  ;;  %s1132_s0 = inlined_call_operand.vmem [shape: f32[2,4,256], index: 0, kind: input, shape index: {}]   ;;  %s1133_s1 = inlined_call_operand.vmem [shape: s32[1,256], index: 1, kind: input, shape index: {}]   ;;  %s1134_s2 = inlined_call_operand.vmem [shape: f32[4,9], index: 2, kind: input, shape index: {}]   ;;  %s1135_s3 = inlined_call_operand.vmem [shape: f32[8,4], index: 3, kind: input, shape index: {}]   ;;  %s1136_s4 = inlined_call_operand.vmem [shape: f32[8,1], index: 4, kind: input, shape index: {}]   ;;  %s1137_s5 = inlined_call_operand.hbm [shape: f32[2,8,256], index: 5, kind: output, shape index: {}]  }
   0x1   :  { %12 = vsyncpa [#allocation3 + $0x1], 0  ;;  %s827_s18 = smov 0   ;;  %s829_s19 = smov 0  }
   0x2   :  { %s831_s20 = smov 0   ;;  %s833_s21 = smov 0  }
   0x3 LB: > { %s848_s22 = sadd.s32 4294967295, %s776_s21   ;;  %s628_s23 = sadd.s32 4294967294, %s776_s21   ;;  %s776_s21 = sphi %s833_s21, %s1153_s21   ;;  %s772_s20 = sphi %s831_s20, %s1152_s20   ;;  %s768_s19 = sphi %s829_s19, %s1151_s19   ;;  %s764_s18 = sphi %s827_s18, %s1150_s18  }
   0x4   : > { %s852_s24 = sadd.s32 1, %s776_s21   ;;  %s135_s25 = sadd.s32 1, %s772_s20 }
   0x5   : > { %s132_s26 = ssub.s32 %s776_s21, %s852_s24  ;;  %p145_p0 = scmp.ne.s32.totalorder %s772_s20, %s768_s19 }
   0x6   : > { %p133_p1 = scmp.eq.s32.totalorder %s132_s26, 0  ;;  %p146_p2 = scmp.eq.s32.totalorder %s848_s22, 1 }
   0x7   : > { %p151_p3 = scmp.ne.s32.totalorder %s768_s19, %s764_s18  ;;  %p152_p4 = scmp.eq.s32.totalorder %s628_s23, 1 }
   0x8   : > { %s863_s27 = scalar_select %p133_p1, %s772_s20, %s135_s25  }
   0x9   : > { %p865_p5 = por %p146_p2, %p145_p0  ;;  %p869_p6 = por %p152_p4, %p151_p3 }
   0xa   : > { %p631_p7 = scmp.ge.s32.totalorder %s776_s21, 1  ;;  %p190_p8 = scmp.lt.s32.totalorder %s776_s21, 3 }
   0xc   : > { %p191_p9 = pnand %p631_p7, %p190_p8 }
   0xd   : > { %v224_v0 = vld [vmem:[%s1134_s2] sm:$0xf] (!%p191_p9)  ;;  %p218_p10 = scmp.lt.s32.totalorder (!%p191_p9), %s848_s22, 1  ;;  %v778_v1 = vmov (!%p191_p9), 2   ;;  %v779_v2 = vmov (!%p191_p9), 1   ;;  %v780_v3 = vmov (!%p191_p9), 4   ;;  %v227_v16 = vlaneseq (!%p191_p9) }
   0xe   : > { %194 = sbr.rel (%p191_p9) target bundleno = 229 (0xe5), region = 40  ;;  %700 = vset.pattern.permute.xlu1 (!%p191_p9), %v778_v1  ;;  %699 = vset.pattern.permute.xlu0 (!%p191_p9), %v779_v2  ;;  %v781_v5 = vmov (!%p191_p9), 5   ;;  %s782_s12 = smov (!%p191_p9), 17   ;;  %v783_v6 = vmov (!%p191_p9), 3   ;;  %v786_v8 = vmov (!%p191_p9), 7   ;;  %v787_v9 = vmov (!%p191_p9), 6  }
   0xf   : > { %334 = vperm.xlu1 (!%p191_p9), %700, %v224_v0   ;;  %291 = vperm.xlu0 (!%p191_p9), %699, %v224_v0   ;;  %s784_s13 = smov (!%p191_p9), 16   ;;  %s785_s14 = smov (!%p191_p9), 15   ;;  %v788_v10 = vmov (!%p191_p9), 0   ;;  %v793_v11 = vmov (!%p191_p9), 8   ;;  %v225_v12 = vld [vmem:[%s1135_s3] sm:$0xff] (!%p191_p9)  ;;  %v913_v20 = vshrl.u32 (!%p191_p9), %v227_v16, 7 }
  0x10   : > { %s789_s15 = smov (!%p191_p9), 1   ;;  %s790_s16 = smov (!%p191_p9), 127   ;;  %v544_v13 = vld [vmem:[%s1136_s4] sm:$0xff] (!%p191_p9)  ;;  %v922_v26 = vand.u32 (!%p191_p9), 127, %v227_v16  ;;  %v795_v44 = vmov (!%p191_p9), 839922192  }
  0x11   : > { %s791_s17 = smov (!%p191_p9), 113   ;;  %s792_s23 = smov (!%p191_p9), 112   ;;  %v226_v17 = vld [vmem:[%s1133_s1] sm:$0x3] (!%p191_p9)  ;;  %v916_v21 = vsub.s32 (!%p191_p9), 0, %v913_v20  ;;  %v925_v27 = vsub.s32 (!%p191_p9), 1, %v913_v20  ;;  %v364_v45 = vunpack.c.l.s4 (!%p191_p9), %v795_v44 }
  0x12   : > { %s794_s25 = smov (!%p191_p9), 111   ;;  %vm242_vm0 = vcmp.ge.s32.totalorder (!%p191_p9), %v226_v17, 1  ;;  %vm305_vm1 = vcmp.le.s32.totalorder (!%p191_p9), %v226_v17, 14  ;;  %vm240_vm2 = vcmp.ge.s32.totalorder (!%p191_p9), %v922_v26, 16  ;;  %vm237_vm9 = vcmp.lt.s32.totalorder (!%p191_p9), %v922_v26, 17  ;;  %s215_s10 = sand.u32 (!%p191_p9), 1, %s768_s19  }
  0x13   : > { %701 = vset.pattern.permute.xlu1 (!%p191_p9), %v780_v3  ;;  %703 = vset.pattern.permute.xlu0 (!%p191_p9), %v781_v5  ;;  %v243_v23 = vsel (!%p191_p9), %vm242_vm0, 1, %v788_v10  ;;  %v306_v25 = vsel (!%p191_p9), %vm305_vm1, 1, %v788_v10  ;;  %vm281_vm10 = vcmp.lt.s32.totalorder (!%p191_p9), %v922_v26, 16  ;;  %v970_v48 = vadd.s32 (!%p191_p9), 128, %v922_v26 }
  0x14   : > { %361 = vperm.xlu1 (!%p191_p9), %701, %v224_v0   ;;  %v928_v28 = vrot.slane (!%p191_p9), %v243_v23, %v916_v21  ;;  %v931_v31 = vrot.slane (!%p191_p9), %v306_v25, %v916_v21  ;;  %v935_v32 = vrot.slane (!%p191_p9), %v243_v23, %v925_v27  ;;  %v946_v35 = vrot.slane (!%p191_p9), %v306_v25, %v925_v27 }
  0x15   : > { %s219_s7 = scalar_select %p218_p10, %s848_s22, 1  ;;  %vm302_vm12 = vcmp.lt.s32.totalorder %v922_v26, 15  ;;  %v365_v56 = vunpack.c.0.s8 %v364_v45  ;;  %vm345_vm15 = vcmp.lt.s32.totalorder %v922_v26, 1  ;;  %vm404_vm0 = vcmp.lt.s32.totalorder %v970_v48, 240 }
  0x16   : > { %vm252_vm3 = vcmp.ne.s32.totalorder %v928_v28, 0  ;;  %vm315_vm4 = vcmp.ne.s32.totalorder %v931_v31, 0  ;;  %vm253_vm6 = vcmp.ne.s32.totalorder %v935_v32, 0  ;;  %vm316_vm8 = vcmp.ne.s32.totalorder %v946_v35, 0 }
  0x17   : > { %s640_s8 = sshll.u32 %s219_s7, 3  ;;  %vm254_vm5 = vmand %vm240_vm2, %vm252_vm3  ;;  %v257_v38 = vsel %vm253_vm6, 1, %v788_v10  ;;  %v320_v46 = vsel %vm316_vm8, 1, %v788_v10  ;;  %v368_v5 = vsub.s32 %v365_v56, %v913_v20  ;;  %v407_v17 = vsel %vm252_vm3, 1, %v788_v10 }
  0x18   : > { %s222_s11 = scalar_lea.vmem %s1132_s0, %s640_s8  ;;  %702 = vset.pattern.permute.xlu1 %v783_v6  ;;  %vm317_vm7 = vmand %vm240_vm2, %vm315_vm4  ;;  %v256_v37 = vsel %vm254_vm5, 1, %v788_v10  ;;  %v265_v43 = vrot.slane %v257_v38, %v916_v21  ;;  %v328_v53 = vrot.slane %v320_v46, %v916_v21 }
  0x19   : > { %v883_v4 = vld [vmem:[%s222_s11] sm:$0xff]  ;;  %353 = vperm.xlu1 %702, %v224_v0   ;;  %v319_v39 = vsel %vm317_vm7, 1, %v788_v10  ;;  %v261_v41 = vrot.slane %v256_v37, %v916_v21  ;;  %vm406_vm5 = vmand %vm404_vm0, %vm253_vm6  ;;  %vm349_vm7 = vcmp.eq.s32.totalorder %v935_v32, 1  ;;  %vm381_vm6 = vcmp.lt.s32.totalorder %v922_v26, 127  ;;  %s632_s11 = sshll.u32 %s215_s10, 4 }
  0x1a   : > { %233 = vrot.lane.b32.xlu0 %v883_v4, %s782_s12  ;;  %v231_v7 = vcombine.high %v883_v4, %v883_v4  ;;  %v324_v47 = vrot.slane %v319_v39, %v916_v21  ;;  %vm267_vm13 = vcmp.eq.s32.totalorder %v265_v43, 1  ;;  %vm994_vm1 = vcmp.eq.s32.totalorder %v328_v53, 1  ;;  %vm458_vm3 = vmand %vm404_vm0, %vm316_vm8 }
  0x1b   : > { %vm974_vm11 = vcmp.eq.s32.totalorder %v261_v41, 1  ;;  %v408_v23 = vsel %vm406_vm5, 1, %v788_v10 }
  0x1c   : > { %vm980_vm14 = vcmp.eq.s32.totalorder %v324_v47, 1  ;;  %v416_v38 = vrot.slane %v408_v23, %v916_v21  ;;  %v530_v23 = vsub.s32 3, %v913_v20 }
  0x1d   : > { %235 = vrot.lane.b32.xlu1 %v231_v7, %s782_s12  ;;  %s641_s12 = sshll.u32 %s848_s22, 8  ;;  %s555_s22 = scalar_lea.sflag [#allocation3], %s215_s10 }
  0x1e   : > { %277 = vrot.lane.b32.xlu0 %v883_v4, %s784_s13  ;;  %706 = vset.pattern.permute.xlu1 %v786_v8  ;;  %vm1050_vm8 = vcmp.eq.s32.totalorder %v416_v38, 1 }
  0x21   : > { %279 = vrot.lane.b32.xlu1 %v231_v7, %s784_s13  ;;  %s217_s13 = scalar_lea.vmem [#allocation2], %s632_s11 }
  0x22   : > { %298 = vrot.lane.b32.xlu0 %v883_v4, %s785_s14 }
  0x25   : > { %300 = vrot.lane.b32.xlu1 %v231_v7, %s785_s14  ;;  %s569_s14 = sshll.u32 %s217_s13, 4  ;;  %s1090_s14 = int_to_ptr.vmem [resolvable:$true] %s569_s14 }
  0x26   : > { %389 = vperm.xlu0 %703, %v224_v0  }
  0x29   : > { %341 = vrot.lane.b32.xlu1 %v883_v4, %s789_s15 }
  0x2a   : > { %704 = vset.pattern.permute.xlu0 %v787_v9 }
  0x2b   : > { %422 = vperm.xlu0 %704, %v224_v0  }
  0x2d   : > { %343 = vrot.lane.b32.xlu1 %v231_v7, %s789_s15 }
  0x2f   : > { %705 = vset.pattern.permute.xlu0 %v788_v10 }
  0x30   : > { %272 = vperm.xlu0 %705, %v224_v0  }
  0x31   : > { %443 = vperm.xlu1 %706, %v224_v0  }
  0x34   : > { %379 = vrot.lane.b32.xlu0 %v231_v7, %s790_s16 }
  0x35   : > { %377 = vrot.lane.b32.xlu1 %v883_v4, %s790_s16 }
  0x36   : > { %707 = vset.pattern.permute.xlu1 %v793_v11 }
  0x38   : > { %396 = vrot.lane.b32.xlu0 %v883_v4, %s791_s17 }
  0x39   : > { %474 = vperm.xlu1 %707, %v224_v0  }
  0x3c   : > { %429 = vrot.lane.b32.xlu0 %v883_v4, %s792_s23 }
  0x3d   : > { %398 = vrot.lane.b32.xlu1 %v231_v7, %s791_s17  ;;  %s1088_s17 = scalar_lea.hbm %s1137_s5, %s641_s12 }
  0x3e   : > { %708 = vset.pattern.permute.xlu1 %v779_v2 }
  0x40   : > { %450 = vrot.lane.b32.xlu0 %v883_v4, %s794_s25 }
  0x41   : > { %431 = vrot.lane.b32.xlu1 %v231_v7, %s792_s23  ;;  %s714_s23 = scalar_lea.vmem %s1090_s14, 256 }
  0x42   : > { %p715_p11 = scmp.ne.s32.totalorder %s1090_s14, %s714_s23 }
  0x44   : > { %491 = vperm.xlu0 %705, %v225_v12   ;;  %p716_p12 = pnand %p715_p11, %p865_p5 }
  0x45   : > { %452 = vrot.lane.b32.xlu1 %v231_v7, %s794_s25  ;;  %s796_s25 = smov [#allocation2]  }
  0x46   : > { %p717_p13 = pneg %p716_p12  ;;  %s718_s26 = sshll.u32 %s796_s25, 4  ;;  %s719_s26 = int_to_ptr.vmem [resolvable:$false] %s718_s26 }
  0x47   : > { %s720_s30 = scalar_lea.vmem %s719_s26, 512  ;;  %p721_p0 = scmp.lt.s32.totalorder %s1090_s14, %s719_s26 }
  0x48   : > { %710 = vset.pattern.permute.xlu0 %v783_v6  ;;  %p722_p1 = scmp.lt.s32.totalorder %s720_s30, %s714_s23 }
  0x49   : > { %537 = vperm.xlu0 %710, %v225_v12   ;;  %505 = vperm.xlu1 %708, %v225_v12  }
  0x4a   : > { %p723_p2 = por %p722_p1, %p721_p0 }
  0x4c   : > { %p724_p3 = pnand %p723_p2, %p717_p13 }
  0x4d   : > { %712 = vset.pattern.permute.xlu0 %v788_v10  ;;  %709 = vset.pattern.permute.xlu1 %v778_v1 }
  0x4e   : > { %521 = vperm.xlu1 %709, %v225_v12  }
  0x52   : > { %711 = vset.pattern.permute.xlu1 %v788_v10 }
  0x53   : > { %547 = vperm.xlu1 %711, %v544_v13  }
  0x8e   : > { %v904_v14 = vpop.permute.xlu1 %334  ;;  %v906_v15 = vpop.permute.xlu0 %291 }
  0x92   : > { %v234_v18 = vpop.permute.xlu0 %233 }
  0x93   : > { %v911_v19 = vpop.permute.xlu1 %361 }
  0x96   : > { %v278_v22 = vpop.permute.xlu0 %277 }
  0x98   : > { %v919_v24 = vpop.permute.xlu1 %353 }
  0x9a   : > { %v299_v29 = vpop.permute.xlu0 %298 }
  0x9c   : > { %v236_v30 = vpop.permute.xlu1 %235 }
  0x9d   : > { %v239_v49 = vsel %vm237_vm9, %v236_v30, %v234_v18  ;;  %v238_v52 = vsel %vm237_vm9, %v234_v18, %v236_v30  ;;  %v369_v30 = vrot.slane %v911_v19, %v368_v5  ;;  %vm384_vm9 = vcmp.eq.s32.totalorder %v931_v31, 1 }
  0x9e   : > { %v268_v59 = vsel %vm974_vm11, %v239_v49, 0.0  ;;  %v269_v62 = vsel %vm267_vm13, %v238_v52, 0.0  ;;  %vm400_vm11 = vcmp.lt.s32.totalorder %v922_v26, 113  ;;  %vm433_vm13 = vcmp.lt.s32.totalorder %v922_v26, 112 }
  0x9f   : > { %v371_v19 = vmul.f32 %v369_v30, %v883_v4 }
  0xa0   : > { %v280_v33 = vpop.permute.xlu1 %279 }
  0xa1   : > { %v283_v50 = vsel %vm281_vm10, %v280_v33, %v278_v22  ;;  %v282_v60 = vsel %vm281_vm10, %v278_v22, %v280_v33  ;;  %v412_v33 = vrot.slane %v407_v17, %v916_v21  ;;  %vm385_vm10 = vcmp.eq.s32.totalorder %v946_v35, 1 }
  0xa2   : > { %v288_v58 = vsel %vm240_vm2, %v283_v50, 0.0  ;;  %vm348_vm2 = vcmp.eq.s32.totalorder %v928_v28, 1  ;;  %v295_v8 = vmul.f32 %v906_v15, %v282_v60  ;;  %v460_v35 = vsel %vm458_vm3, 1, %v788_v10 }
  0xa3   : > { %v294_v6 = vmul.f32 %v906_v15, %v288_v58 }
  0xa4   : > { %v301_v36 = vpop.permute.xlu1 %300 }
  0xa5   : > { %v938_v34 = vpop.permute.xlu0 %389  ;;  %v304_v61 = vsel %vm302_vm12, %v301_v36, %v299_v29  ;;  %v303_v1 = vsel %vm302_vm12, %v299_v29, %v301_v36  ;;  %vm1046_vm12 = vcmp.eq.s32.totalorder %v412_v33, 1 }
  0xa6   : > { %v331_v9 = vsel %vm980_vm14, %v304_v61, 0.0  ;;  %v332_v13 = vsel %vm994_vm1, %v303_v1, 0.0 }
  0xa7   : > { %v337_v25 = vmul.f32 %v904_v14, %v331_v9  ;;  %v338_v32 = vmul.f32 %v904_v14, %v332_v13 }
  0xa8   : > { %v342_v42 = vpop.permute.xlu1 %341 }
  0xaa   : > { %v959_v40 = vpop.permute.xlu0 %422 }
  0xac   : > { %v344_v55 = vpop.permute.xlu1 %343 }
  0xad   : > { %v347_v7 = vsel %vm345_vm15, %v344_v55, %v342_v42  ;;  %v346_v11 = vsel %vm345_vm15, %v342_v42, %v344_v55 }
  0xae   : > { %v350_v22 = vsel %vm348_vm2, %v347_v7, 0.0  ;;  %v351_v29 = vsel %vm349_vm7, %v346_v11, 0.0 }
  0xaf   : > { %v273_v54 = vpop.permute.xlu0 %272  ;;  %v356_v36 = vmul.f32 %v919_v24, %v350_v22  ;;  %v357_v41 = vmul.f32 %v919_v24, %v351_v29  ;;  %v459_v24 = vsel %vm315_vm4, 1, %v788_v10  ;;  %v468_v10 = vrot.slane %v460_v35, %v916_v21 }
  0xb0   : > { %v275_v63 = vmul.f32 %v273_v54, %v268_v59  ;;  %v276_v2 = vmul.f32 %v273_v54, %v269_v62  ;;  %v1000_v3 = vpop.permute.xlu1 %443  ;;  %v464_v53 = vrot.slane %v459_v24, %v916_v21  ;;  %v373_v54 = vcombine.high %v371_v19, %v371_v19 }
  0xb1   : > { %vm454_vm4 = vcmp.lt.s32.totalorder %v922_v26, 111  ;;  %vm470_vm15 = vcmp.eq.s32.totalorder %v468_v10, 1 }
  0xb2   : > { %v296_v16 = vadd.f32 %v294_v6, %v275_v63  ;;  %v297_v18 = vadd.f32 %v295_v8, %v276_v2  ;;  %vm469_vm14 = vcmp.eq.s32.totalorder %v464_v53, 1 }
  0xb3   : > { %v380_v12 = vpop.permute.xlu0 %379 }
  0xb4   : > { %v378_v15 = vpop.permute.xlu1 %377  ;;  %v339_v28 = vadd.f32 %v337_v25, %v296_v16  ;;  %v340_v39 = vadd.f32 %v338_v32, %v297_v18  ;;  %v514_v25 = vsub.s32 2, %v913_v20 }
  0xb5   : > { %v382_v37 = vsel %vm381_vm6, %v378_v15, %v380_v12  ;;  %v383_v14 = vsel %vm381_vm6, %v380_v12, %v378_v15 }
  0xb6   : > { %v386_v44 = vsel %vm384_vm9, %v382_v37, 0.0  ;;  %v358_v45 = vadd.f32 %v356_v36, %v339_v28  ;;  %v359_v49 = vadd.f32 %v357_v41, %v340_v39  ;;  %v387_v4 = vsel %vm385_vm10, %v383_v14, 0.0 }
  0xb7   : > { %v397_v42 = vpop.permute.xlu0 %396  ;;  %v392_v51 = vmul.f32 %v938_v34, %v386_v44  ;;  %v393_v59 = vmul.f32 %v938_v34, %v387_v4 }
  0xb8   : > { %v475_v43 = vpop.permute.xlu1 %474  ;;  %v375_v58 = vadd.f32 %v371_v19, %v358_v45  ;;  %v376_v61 = vadd.f32 %v373_v54, %v359_v49 }
  0xba   : > { %v394_v63 = vadd.f32 %v392_v51, %v375_v58  ;;  %v395_v34 = vadd.f32 %v393_v59, %v376_v61 }
  0xbb   : > { %v430_v55 = vpop.permute.xlu0 %429 }
  0xbc   : > { %v399_v50 = vpop.permute.xlu1 %398 }
  0xbd   : > { %v401_v31 = vsel %vm400_vm11, %v397_v42, %v399_v50  ;;  %v402_v52 = vsel %vm400_vm11, %v399_v50, %v397_v42 }
  0xbe   : > { %v419_v56 = vsel %vm1046_vm12, %v401_v31, 0.0  ;;  %v420_v57 = vsel %vm1050_vm8, %v402_v52, 0.0 }
  0xbf   : > { %v425_v60 = vmul.f32 %v959_v40, %v419_v56  ;;  %v426_v0 = vmul.f32 %v959_v40, %v420_v57  ;;  %v451_v40 = vpop.permute.xlu0 %450 }
  0xc0   : > { %v432_v62 = vpop.permute.xlu1 %431 }
  0xc1   : > { %v434_v1 = vsel %vm433_vm13, %v430_v55, %v432_v62  ;;  %v435_v2 = vsel %vm433_vm13, %v432_v62, %v430_v55  ;;  %v427_v6 = vadd.f32 %v425_v60, %v394_v63  ;;  %v428_v11 = vadd.f32 %v426_v0, %v395_v34 }
  0xc2   : > { %v441_v5 = vsel %vm404_vm0, %v435_v2, 0.0  ;;  %v446_v7 = vmul.f32 %v1000_v3, %v434_v1 }
  0xc3   : > { %v447_v8 = vmul.f32 %v1000_v3, %v441_v5  ;;  %v492_v30 = vpop.permute.xlu0 %491 }
  0xc4   : > { %v453_v9 = vpop.permute.xlu1 %452  ;;  %v448_v48 = vadd.f32 %v446_v7, %v427_v6 }
  0xc5   : > { %v455_v12 = vsel %vm454_vm4, %v451_v40, %v453_v9  ;;  %v456_v13 = vsel %vm454_vm4, %v453_v9, %v451_v40  ;;  %v449_v18 = vadd.f32 %v447_v8, %v428_v11 }
  0xc6   : > { %v471_v16 = vsel %vm469_vm14, %v455_v12, 0.0  ;;  %v472_v17 = vsel %vm470_vm15, %v456_v13, 0.0 }
  0xc7   : > { %v477_v22 = vmul.f32 %v475_v43, %v471_v16  ;;  %v478_v26 = vmul.f32 %v475_v43, %v472_v17 }
  0xc8   : > { %v506_v15 = vpop.permute.xlu1 %505  ;;  %v538_v44 = vpop.permute.xlu0 %537 }
  0xc9   : > { %v479_v29 = vadd.f32 %v477_v22, %v448_v48  ;;  %v480_v3 = vadd.f32 %v478_v26, %v449_v18 }
  0xcb   : > { %v484_v32 = vrot.slane %v479_v29, %v916_v21  ;;  %v488_v33 = vrot.slane %v480_v3, %v916_v21  ;;  %v499_v28 = vrot.slane %v479_v29, %v925_v27  ;;  %v503_v36 = vrot.slane %v480_v3, %v925_v27 }
  0xcc   : > { %v531_v37 = vrot.slane %v479_v29, %v530_v23  ;;  %v535_v38 = vrot.slane %v480_v3, %v530_v23  ;;  %v515_v39 = vrot.slane %v479_v29, %v514_v25  ;;  %v519_v41 = vrot.slane %v480_v3, %v514_v25 }
  0xcd   : > { %v494_v20 = vmul.f32 %v492_v30, %v484_v32  ;;  %v495_v42 = vmul.f32 %v492_v30, %v488_v33  ;;  %v508_v43 = vmul.f32 %v506_v15, %v499_v28  ;;  %v509_v14 = vmul.f32 %v506_v15, %v503_v36  ;;  %v522_v19 = vpop.permute.xlu1 %521 }
  0xce   : > { %v524_v24 = vmul.f32 %v522_v19, %v515_v39  ;;  %v525_v45 = vmul.f32 %v522_v19, %v519_v41  ;;  %v540_v47 = vmul.f32 %v538_v44, %v531_v37  ;;  %v541_v27 = vmul.f32 %v538_v44, %v535_v38 }
  0xcf   : > { %v510_v21 = vadd.f32 %v508_v43, %v494_v20  ;;  %v511_v46 = vadd.f32 %v509_v14, %v495_v42 }
  0xd1   : > { %v526_v35 = vadd.f32 %v524_v24, %v510_v21  ;;  %v527_v49 = vadd.f32 %v525_v45, %v511_v46 }
  0xd2   : > { %v548_v4 = vpop.permute.xlu1 %547 }
  0xd3   : > { %v542_v50 = vadd.f32 %v540_v47, %v526_v35  ;;  %v543_v51 = vadd.f32 %v541_v27, %v527_v49 }
  0xd5   : > { %v550_v31 = vadd.f32 %v548_v4, %v542_v50  ;;  %v551_v52 = vadd.f32 %v548_v4, %v543_v51 }
  0xd7   : > { %552 = vst [vmem:[%s217_s13] sm:$0xff] %v550_v31  ;;  %553 = vst [vmem:[%s217_s13 + $0x8] sm:$0xff] %v551_v52 }
  0xd8   : > { %727 = shalt.err (!%p724_p3)
}
  0xd9   : > { %s728_s6 = scalar_lea.hbm %s1088_s17, 256  ;;  %s732_s9 = scalar_lea.hbm %s1137_s5, 512 }
  0xda   : > { %p729_p4 = scmp.ne.s32.totalorder %s1088_s17, %s728_s6  ;;  %p733_p9 = scmp.lt.u32.totalorder %s1088_s17, %s1137_s5 }
  0xdb   : > { %p734_p10 = scmp.lt.u32.totalorder %s732_s9, %s728_s6  ;;  %p736_p12 = scmp.lt.u32.totalorder %s728_s6, %s1088_s17 }
  0xdc   : > { %p730_p7 = pnand %p729_p4, %p865_p5 }
  0xdd   : > { %p735_p11 = por %p734_p10, %p733_p9 }
  0xde   : > { %p731_p8 = pneg %p730_p7 }
  0xdf   : > { %p737_p13 = por %p736_p12, %p735_p11 }
  0xe1   : > { %p738_p0 = pnand %p737_p13, %p731_p8 }
  0xe3   : > { %741 = shalt.err (!%p738_p0)
}
  0xe4   : > { %642 = dma.vmem_to_hbm [thread:$0]  (%p865_p5), %s1090_s14, 256, %s1088_s17, %s555_s22  }
  0xe5 PF: > { %p648_p1 = scmp.ge.s32.totalorder %s776_s21, 2  ;;  %s581_s12 = sand.u32 1, %s764_s18  }
  0xe6   : > { %s582_s13 = scalar_lea.sflag [#allocation3], %s581_s12 }
  0xe7   : > { %p645_p2 = pnand %p648_p1, %p869_p6 }
  0xe9   : > { %759 = dma.done.wait (!%p645_p2), %s582_s13, 256  }
  0xea   : > { %761 = vsyncadd (!%p645_p2), %s582_s13, 4294967040  ;;  %p15_p3 = scmp.ge.s32.totalorder %s852_s24, 4   ;;  %s1150_s18 = smov %s768_s19 }
  0xeb   : > { %s1151_s19 = smov %s772_s20  ;;  %s1152_s20 = smov %s863_s27 }
  0xec   : > { %s1153_s21 = smov %s852_s24  ;;  %17 = sbr.rel (!%p15_p3) target bundleno = 3 (0x3), region = 75 }
  0xf3   :  { %587 = vsyncpa [#allocation3], 1 }
  0xf4   :  { %589 = vsyncpa [#allocation3 + $0x1], 1 }

</bundles_post_ra>
